<compile_context>
chip_gen: v6e
topology: v6e:2x2x1
jax: 0.10.0
libtpu: 0.0.40
codegen_flags: <defaults>
</compile_context>

<pallas_src>
import functools

import jax
import jax.numpy as jnp
from jax.experimental import pallas as pl
from jax.experimental.pallas import tpu as pltpu


def linear_encoder_kernel(x_ref, w_ref, b_ref, out_ref, *, precision):
    # x_ref: (TB, D), w_ref: (D, 2Z), b_ref: (1, 2Z), out_ref: (TB, 2Z)
    out_ref[...] = (
        jnp.dot(
            x_ref[...],
            w_ref[...],
            preferred_element_type=jnp.float32,
            precision=precision,
        )
        + b_ref[...]
    ).astype(out_ref.dtype)


def _pick_batch_tile(B, D, Z2, x_itemsize, vmem_budget_bytes):
    """Largest batch tile (single step if possible) fitting the VMEM budget."""
    w_bytes = (D * Z2 + Z2) * 4 * 2          # resident weights+bias (dbl-buffered)

    def usage(tb):
        x_bytes = 2 * tb * D * x_itemsize    # double-buffered input tile
        out_bytes = 2 * tb * Z2 * 4          # double-buffered fused output tile
        return x_bytes + out_bytes + w_bytes

    if usage(B) <= vmem_budget_bytes:
        return B                             # one grid step: no per-step overhead
    per_row = 2 * D * x_itemsize + 2 * Z2 * 4
    tb = max(8, ((vmem_budget_bytes - w_bytes) // per_row) // 8 * 8)
    return int(min(tb, B))


def linear_encoder_forward(
    x,
    w_fused,
    b_fused,
    *,
    tb=None,
    vmem_budget_bytes=12 * 1024 * 1024,
    vmem_limit_bytes=None,
    precision=None,
):
    """x: (B, D); w_fused: (D, 2Z) = [W_mu | W_logvar]; b_fused: (1, 2Z).

    Returns (mu, logvar), each (B, Z).
    """
    B, D = x.shape
    Z2 = w_fused.shape[-1]
    Z = Z2 // 2

    if tb is None:
        tb = _pick_batch_tile(B, D, Z2, x.dtype.itemsize, vmem_budget_bytes)
    tb = int(min(tb, B))
    grid = (pl.cdiv(B, tb),)

    x_spec = pl.BlockSpec((tb, D), lambda i: (i, 0))
    # Constant index_map: weights/bias DMA'd once, resident across batch tiles.
    w_spec = pl.BlockSpec((D, Z2), lambda i: (0, 0))
    b_spec = pl.BlockSpec((1, Z2), lambda i: (0, 0))
    out_spec = pl.BlockSpec((tb, Z2), lambda i: (i, 0))

    bytes_accessed = (
        B * D * x.dtype.itemsize      # x
        + D * Z2 * 4 + Z2 * 4         # fused weight + bias
        + B * Z2 * 4                  # fused output
    )

    fused = pl.pallas_call(
        functools.partial(linear_encoder_kernel, precision=precision),
        out_shape=jax.ShapeDtypeStruct((B, Z2), jnp.float32),
        grid=grid,
        in_specs=[x_spec, w_spec, b_spec],
        out_specs=out_spec,
        compiler_params=pltpu.CompilerParams(
            dimension_semantics=("parallel",),
            vmem_limit_bytes=vmem_limit_bytes,
        ),
        cost_estimate=pl.CostEstimate(
            flops=2 * B * D * Z2,
            transcendentals=0,
            bytes_accessed=bytes_accessed,
        ),
    )(x, w_fused, b_fused)

    # Wrapper-side slicing is free XLA work (no lane-sparse in-kernel selects).
    return fused[:, :Z], fused[:, Z:]


def make_params(key, outd, z_dim):
    """PyTorch-style nn.Linear init, packed as a fused (in, 2*out) weight."""
    ks = jax.random.split(key, 4)
    bound = 1.0 / jnp.sqrt(jnp.float32(outd))
    w_mu = jax.random.uniform(ks[0], (outd, z_dim), jnp.float32, -bound, bound)
    b_mu = jax.random.uniform(ks[1], (z_dim,), jnp.float32, -bound, bound)
    w_lv = jax.random.uniform(ks[2], (outd, z_dim), jnp.float32, -bound, bound)
    b_lv = jax.random.uniform(ks[3], (z_dim,), jnp.float32, -bound, bound)
    w_fused = jnp.concatenate([w_mu, w_lv], axis=1)            # (D, 2Z)
    b_fused = jnp.concatenate([b_mu, b_lv])[None, :]           # (1, 2Z)
    return w_fused, b_fused


def reference_forward(x, w_fused, b_fused, precision=None):
    z = w_fused.shape[-1] // 2
    out = jnp.dot(x, w_fused, precision=precision) + b_fused
    return out[:, :z], out[:, z:]


if __name__ == "__main__":
    B, D, Z = 64, 32, 8                     # batch, outd, z_dim
    key = jax.random.PRNGKey(0)
    k_x, k_p = jax.random.split(key)

    x = jax.random.normal(k_x, (B, D), jnp.float32)
    w_fused, b_fused = make_params(k_p, D, Z)

    mu, logvar = linear_encoder_forward(x, w_fused, b_fused)   # tb=B, grid=(1,)
    mu, logvar = jax.block_until_ready((mu, logvar))
    mu_ref, logvar_ref = reference_forward(x, w_fused, b_fused)

    assert mu.shape == (B, Z) and logvar.shape == (B, Z)
    assert jnp.allclose(mu, mu_ref, atol=1e-5, rtol=1e-5), "mu mismatch"
    assert jnp.allclose(logvar, logvar_ref, atol=1e-5, rtol=1e-5), "logvar mismatch"
    print("KERNEL_OK")
</pallas_src>

<mosaic_0001>
module attributes {stable_mosaic.version = 11 : i64} {
  func.func @linear_encoder_kernel(%arg0: i32, %arg1: memref<64x32xf32, #tpu.memory_space<vmem>>, %arg2: memref<32x16xf32, #tpu.memory_space<vmem>>, %arg3: memref<1x16xf32, #tpu.memory_space<vmem>>, %arg4: memref<64x16xf32, #tpu.memory_space<vmem>>) attributes {dimension_semantics = [#tpu.dimension_semantics<parallel>], iteration_bounds = array<i64: 1>, scalar_prefetch = 0 : i64, scratch_operands = 0 : i64, tpu.core_type = #tpu.core_type<tc>, window_params = [{transform_indices = @transform_0, window_bounds = array<i64: 64, 32>}, {pipeline_mode = #tpu.pipeline_mode<synchronous>, transform_indices = @transform_1, window_bounds = array<i64: 32, 16>}, {pipeline_mode = #tpu.pipeline_mode<synchronous>, transform_indices = @transform_2, window_bounds = array<i64: 1, 16>}, {transform_indices = @transform_3, window_bounds = array<i64: 64, 16>}]} {
    %c0 = arith.constant 0 : index
    %c0_0 = arith.constant 0 : index
    %0 = vector.load %arg1[%c0, %c0_0] : memref<64x32xf32, #tpu.memory_space<vmem>>, vector<64x32xf32>
    %c0_1 = arith.constant 0 : index
    %c0_2 = arith.constant 0 : index
    %1 = vector.load %arg2[%c0_1, %c0_2] : memref<32x16xf32, #tpu.memory_space<vmem>>, vector<32x16xf32>
    %cst = arith.constant dense<0.000000e+00> : vector<64x16xf32>
    %2 = tpu.matmul %0, %1, %cst {dimension_numbers = #tpu.dot_dimension_numbers<[1], [0], [0], [1], [0, 0, 1, 1], [], []>} : vector<64x32xf32>, vector<32x16xf32>, vector<64x16xf32> -> vector<64x16xf32>
    %c0_3 = arith.constant 0 : index
    %c0_4 = arith.constant 0 : index
    %3 = vector.load %arg3[%c0_3, %c0_4] : memref<1x16xf32, #tpu.memory_space<vmem>>, vector<1x16xf32>
    %4 = vector.broadcast %3 : vector<1x16xf32> to vector<64x16xf32>
    %5 = arith.addf %2, %4 : vector<64x16xf32>
    %c0_5 = arith.constant 0 : index
    %c0_6 = arith.constant 0 : index
    %6 = vector.load %arg4[%c0_5, %c0_6] : memref<64x16xf32, #tpu.memory_space<vmem>>, vector<64x16xf32>
    tpu.vector_store %arg4[%c0_5, %c0_6], %5 {strides = array<i32>} : memref<64x16xf32, #tpu.memory_space<vmem>>, vector<64x16xf32>,
    return
  }
  func.func @transform_0(%arg0: i32) -> (i32, i32) {
    %c0_i32 = arith.constant 0 : i32
    %c0_i32_0 = arith.constant 0 : i32
    return %arg0, %c0_i32 : i32, i32
  }
  func.func @transform_1(%arg0: i32) -> (i32, i32) {
    %c0_i32 = arith.constant 0 : i32
    %c0_i32_0 = arith.constant 0 : i32
    %c0_i32_1 = arith.constant 0 : i32
    return %c0_i32, %c0_i32_0 : i32, i32
  }
  func.func @transform_2(%arg0: i32) -> (i32, i32) {
    %c0_i32 = arith.constant 0 : i32
    %c0_i32_0 = arith.constant 0 : i32
    %c0_i32_1 = arith.constant 0 : i32
    return %c0_i32, %c0_i32_0 : i32, i32
  }
  func.func @transform_3(%arg0: i32) -> (i32, i32) {
    %c0_i32 = arith.constant 0 : i32
    %c0_i32_0 = arith.constant 0 : i32
    return %arg0, %c0_i32 : i32, i32
  }
}

</mosaic_0001>

<bundles_post_ra>
// kernel: tpu_custom_call.1
= control target key start
LH: loop header
LB: loop body
LE: loop exit
PB: predicated region body
PF: predicated region fallthrough
CT: control target
= control target key end

     0   :  { %vm33_vm0 = vcmask 261120   ;;  %vm163_vm1 = vcmask 130048   ;;  %s324_s1 = inlined_call_operand.vmem [shape: f32[32,16], index: 1, kind: input, shape index: {}]   ;;  %s325_s0 = inlined_call_operand.vmem [shape: f32[64,32], index: 0, kind: input, shape index: {}]   ;;  %s326_s2 = inlined_call_operand.vmem [shape: f32[1,16], index: 2, kind: input, shape index: {}]   ;;  %s327_s3 = inlined_call_operand.vmem [shape: f32[64,16], index: 3, kind: output, shape index: {}]  }
   0x1   :  { %v25_v0 = vld [vmem:[%s324_s1 + $0x18] sm:$0xff]  ;;  %v24_v1 = vld [vmem:[%s324_s1 + $0x10] sm:$0xff]  ;;  %v23_v2 = vld [vmem:[%s324_s1 + $0x8] sm:$0xff] }
   0x2   :  { %197 = vmatprep.subr.mxu0 %v25_v0  ;;  %217 = vmatprep.subr.mxu1 %v25_v0  ;;  %v22_v3 = vld [vmem:[%s324_s1] sm:$0xff]  ;;  %v15_v6 = vld [vmem:[%s325_s0 + $0x8] sm:$0xff]  ;;  %v16_v8 = vld [vmem:[%s325_s0 + $0x10] sm:$0xff] }
   0x3   :  { %198 = vmatpush3.msra.mxu0 %v25_v0  ;;  %221 = vmatpush3.msra.mxu1 %v25_v0  ;;  %v14_v4 = vld [vmem:[%s325_s0] sm:$0xff]  ;;  %v19_v7 = vld [vmem:[%s325_s0 + $0x28] sm:$0xff]  ;;  %v20_v9 = vld [vmem:[%s325_s0 + $0x30] sm:$0xff] }
   0x4   :  { %199 = vmatprep.subr.mxu0 %v24_v1  ;;  %218 = vmatprep.subr.mxu1 %v24_v1  ;;  %v18_v5 = vld [vmem:[%s325_s0 + $0x20] sm:$0xff]  ;;  %v17_v10 = vld [vmem:[%s325_s0 + $0x18] sm:$0xff] }
   0x5   :  { %200 = vmatpush3.msra.mxu0 %v24_v1  ;;  %222 = vmatpush3.msra.mxu1 %v24_v1  ;;  %v21_v11 = vld [vmem:[%s325_s0 + $0x38] sm:$0xff]  ;;  %v176_v12 = vld [vmem:[%s326_s2] ss:$0 sm:$0xff] }
   0x6   :  { %201 = vmatprep.subr.mxu0 %v23_v2  ;;  %219 = vmatprep.subr.mxu1 %v23_v2 }
   0x7   :  { %202 = vmatpush3.msra.mxu0 %v23_v2  ;;  %223 = vmatpush3.msra.mxu1 %v23_v2 }
   0x8   :  { %203 = vmatprep.subr.mxu0 %v22_v3  ;;  %220 = vmatprep.subr.mxu1 %v22_v3 }
   0x9   :  { %204 = vmatpush3.msra.mxu0 %v22_v3  ;;  %224 = vmatpush3.msra.mxu1 %v22_v3 }
   0xa   :  { %205 = vmatprep.mubr.msk.f32.mxu0 %vm33_vm0, %v14_v4  ;;  %211 = vmatprep.mubr.msk.f32.mxu1 %vm33_vm0, %v18_v5 }
   0xb   :  { %206 = vmatmul.mubr.msk.f32.vlgmr.msra.gmra.mxu0 %vm33_vm0, %v15_v6  ;;  %212 = vmatmul.mubr.msk.f32.vlgmr.msra.gmra.mxu1 %vm33_vm0, %v19_v7 }
   0xc   :  { %208 = vmatprep.mubr.msk.f32.mxu0 %vm33_vm0, %v16_v8  ;;  %214 = vmatprep.mubr.msk.f32.mxu1 %vm33_vm0, %v20_v9 }
   0xf   :  { %209 = vmatmul.mubr.msk.f32.gmra.mxu0 %vm33_vm0, %v17_v10  ;;  %215 = vmatmul.mubr.msk.f32.gmra.mxu1 %vm33_vm0, %v21_v11 }
  0xcb   :  { %v207_v13 = vpop.f32.mrf.mxu0  ;;  %v213_v14 = vpop.f32.mrf.mxu1 }
  0xcc   :  { %v130_v15 = vadd.f32 %v207_v13, %v176_v12  ;;  %v150_v16 = vadd.f32 %v213_v14, %v176_v12 }
  0xcd   :  { %v124_v17 = vpop.f32.mrf.mxu0  ;;  %v144_v18 = vpop.f32.mrf.mxu1 }
  0xce   :  { %165 = vst.msk [vmem:[%s327_s3 + $0x8] sm:$0xff] %vm163_vm1, %v130_v15  ;;  %169 = vst.msk [vmem:[%s327_s3 + $0x28] sm:$0xff] %vm163_vm1, %v150_v16  ;;  %v125_v19 = vadd.f32 %v176_v12, %v124_v17  ;;  %v145_v20 = vadd.f32 %v176_v12, %v144_v18 }
  0xcf   :  { %v210_v21 = vpop.f32.mrf.mxu0  ;;  %v216_v22 = vpop.f32.mrf.mxu1 }
  0xd0   :  { %164 = vst.msk [vmem:[%s327_s3] sm:$0xff] %vm163_vm1, %v125_v19  ;;  %168 = vst.msk [vmem:[%s327_s3 + $0x20] sm:$0xff] %vm163_vm1, %v145_v20  ;;  %v140_v23 = vadd.f32 %v210_v21, %v176_v12  ;;  %v160_v24 = vadd.f32 %v216_v22, %v176_v12 }
  0xd1   :  { %v134_v25 = vpop.f32.mrf.mxu0  ;;  %v154_v26 = vpop.f32.mrf.mxu1 }
  0xd2   :  { %167 = vst.msk [vmem:[%s327_s3 + $0x18] sm:$0xff] %vm163_vm1, %v140_v23  ;;  %171 = vst.msk [vmem:[%s327_s3 + $0x38] sm:$0xff] %vm163_vm1, %v160_v24  ;;  %v135_v27 = vadd.f32 %v176_v12, %v134_v25  ;;  %v155_v28 = vadd.f32 %v176_v12, %v154_v26 }
  0xd4   :  { %166 = vst.msk [vmem:[%s327_s3 + $0x10] sm:$0xff] %vm163_vm1, %v135_v27  ;;  %170 = vst.msk [vmem:[%s327_s3 + $0x30] sm:$0xff] %vm163_vm1, %v155_v28 }

</bundles_post_ra>
